<compile_context>
chip_gen: v5e
topology: v5e:2x2
jax: 0.10.0
libtpu: 0.0.40
codegen_flags: <defaults>
</compile_context>

<pallas_src>
import jax
import jax.numpy as jnp
from jax import lax
from jax.experimental import pallas as pl
from jax.experimental.pallas import tpu as pltpu

# Feature dimensioning consistent with
#   bn.num_features = (sum(embed_setting) + pca_vector) * 2 + instant.output_dim
# chosen as (24 + 16) * 2 + 48 = 128 so the feature axis is lane-dense.
D_EUH = 40      # sum(embed_setting) + pca_vector
D_EC  = 40      # second copy of the "* 2"
D_EUL = 48      # instant_interest_model.output_dim
F     = D_EUH + D_EUL + D_EC        # = 128 = bn.num_features
DEFAULT_TM = 1024                   # row tile (multiple of 128); VMEM use stays ~3-4 MiB


def _round_up(x, m):
    return ((x + m - 1) // m) * m


def _pick_tile(n, tm_max=DEFAULT_TM):
    """Row tile: multiple of 128 (keeps the (1,TM) output store unmasked/lane-dense),
    capped at tm_max, and — once n is large enough — an even count (>=2) of grid steps
    so the single 'parallel' grid axis splits across both v7x TensorCores."""
    if n <= 128:
        return 128
    nt = max(2, pl.cdiv(n, tm_max))
    if nt % 2:
        nt += 1
    return _round_up(pl.cdiv(n, nt), 128)


def _user_model_kernel(e_ref, w1g_ref, b1g_ref, w2g_ref, b2g_ref,
                       w1m_ref, b1m_ref, w2m_ref, b2m_ref,
                       w1o_ref, b1o_ref, w2o_ref, b2o_ref, out_ref):
    f32, bf16 = jnp.float32, jnp.bfloat16
    e = e_ref[...]                                        # (TM, F) bf16, raw e_concat

    def layer1(x, w_ref, b_ref):
        # MXU matmul (bf16 operands, f32 accumulation) + bias + ReLU + bf16 cast,
        # materialized once in the dtype the next matmul consumes.
        y = jnp.dot(x, w_ref[...], preferred_element_type=f32) + b_ref[...]
        return jnp.maximum(y, 0.0).astype(bf16)

    def layer2(x, w_ref, b_ref):
        return jnp.dot(x, w_ref[...], preferred_element_type=f32) + b_ref[...]

    # gate(BN(e)): the eval-mode BatchNorm affine is folded into w1g/b1g at init.
    # TODO(synk): training-mode batch statistics over the B*T rows are not reproduced.
    g = layer2(layer1(e, w1g_ref, b1g_ref), w2g_ref, b2g_ref)          # (TM, F) f32

    # e_output input: gate * raw e_concat, produced once directly in bf16.
    h = (g * e.astype(f32)).astype(bf16)                               # (TM, F) bf16

    # mlp(gate * raw)
    m = layer2(layer1(h, w1m_ref, b1m_ref), w2m_ref, b2m_ref).astype(bf16)

    # out_mlp: Linear -> ReLU -> (1-wide Linear), emitted lane-dense as a (1, TM) row.
    z = layer1(m, w1o_ref, b1o_ref)                                    # (TM, F) bf16
    # NT contraction (z over its last dim vs. the (1,F) weight row): lets Mosaic use the
    # transposed-RHS MXU path instead of relaying out a (TM,128) source-level transpose.
    r_row = lax.dot_general(w2o_ref[...], z,
                            dimension_numbers=(((1,), (1,)), ((), ())),
                            preferred_element_type=f32)                # (1, TM)
    out_ref[...] = r_row + b2o_ref[0]                                  # scalar bias (SMEM)


def user_model_pallas(e_flat, params, tm_max=DEFAULT_TM):
    """e_flat: (N, F) bfloat16 raw e_concat rows. Returns (N,) float32 scores."""
    N = e_flat.shape[0]
    TM = _pick_tile(N, tm_max)
    nt = pl.cdiv(N, TM)
    Np = nt * TM
    if Np != N:
        e_flat = jnp.pad(e_flat, ((0, Np - N), (0, 0)))

    full = lambda shape: pl.BlockSpec(shape, lambda i: (0, 0))
    cost = pl.CostEstimate(
        flops=2 * Np * F * (4 * F + 1),
        transcendentals=0,
        bytes_accessed=Np * F * 2 + Np * 4 + (5 * F * F + F) * 2 + 6 * F * 4)

    out = pl.pallas_call(
        _user_model_kernel,
        out_shape=jax.ShapeDtypeStruct((nt, 1, TM), jnp.float32),
        grid=(nt,),
        in_specs=[
            pl.BlockSpec((TM, F), lambda i: (i, 0)),             # e_concat row tile (bf16)
            full((F, F)), full((1, F)),                          # gate L1 (BN folded in)
            full((F, F)), full((1, F)),                          # gate L2
            full((F, F)), full((1, F)),                          # mlp  L1
            full((F, F)), full((1, F)),                          # mlp  L2
            full((F, F)), full((1, F)),                          # out_mlp L1
            full((1, F)),                                        # out_mlp L2 weight row
            pl.BlockSpec(memory_space=pltpu.MemorySpace.SMEM),   # b2o scalar bias
        ],
        out_specs=pl.BlockSpec((None, 1, TM), lambda i: (i, 0, 0)),   # lane-dense rows
        compiler_params=pltpu.CompilerParams(
            dimension_semantics=("parallel",)),
        cost_estimate=cost,
    )(e_flat,
      params["w1g"], params["b1g"], params["w2g"], params["b2g"],
      params["w1m"], params["b1m"], params["w2m"], params["b2m"],
      params["w1o"], params["b1o"], params["w2o"], params["b2o"])
    return out.reshape(-1)[:N]


def init_params(key, dh, dt, dg):
    ks = jax.random.split(key, 20)
    s = 0.05
    rn = lambda k, shp: (s * jax.random.normal(k, shp)).astype(jnp.float32)

    masters = {}                      # f32 master weights (unfolded, for reference math)
    masters["w1g"], masters["b1g"] = rn(ks[0], (F, F)), rn(ks[1], (1, F))
    masters["w2g"], masters["b2g"] = rn(ks[2], (F, F)), rn(ks[3], (1, F))
    masters["w1m"], masters["b1m"] = rn(ks[4], (F, F)), rn(ks[5], (1, F))
    masters["w2m"], masters["b2m"] = rn(ks[6], (F, F)), rn(ks[7], (1, F))
    masters["w1o"], masters["b1o"] = rn(ks[8], (F, F)), rn(ks[9], (1, F))
    masters["w2o"], masters["b2o"] = rn(ks[10], (1, F)), rn(ks[11], (1, 1))
    # BatchNorm1d (eval mode) -> affine scale/bias
    gamma = 1.0 + 0.1 * jax.random.normal(ks[12], (F,)).astype(jnp.float32)
    beta  = 0.1 * jax.random.normal(ks[13], (F,)).astype(jnp.float32)
    mean  = 0.1 * jax.random.normal(ks[14], (F,)).astype(jnp.float32)
    var   = 1.0 + 0.1 * jnp.abs(jax.random.normal(ks[15], (F,))).astype(jnp.float32)
    scale = gamma / jnp.sqrt(var + 1e-5)
    masters["bn_scale"] = scale.reshape(1, F)
    masters["bn_bias"]  = (beta - mean * scale).reshape(1, F)

    # Kernel params: BN folded into the gate's first Linear IN F32, then cast to bf16.
    bf = lambda a: a.astype(jnp.bfloat16)
    w1g_fold = masters["bn_scale"].reshape(F, 1) * masters["w1g"]        # f32 fold
    b1g_fold = masters["bn_bias"] @ masters["w1g"] + masters["b1g"]      # f32 fold
    params = {
        "w1g": bf(w1g_fold),        "b1g": b1g_fold,
        "w2g": bf(masters["w2g"]),  "b2g": masters["b2g"],
        "w1m": bf(masters["w1m"]),  "b1m": masters["b1m"],
        "w2m": bf(masters["w2m"]),  "b2m": masters["b2m"],
        "w1o": bf(masters["w1o"]),  "b1o": masters["b1o"],
        "w2o": bf(masters["w2o"]),                    # (1, F) final weight row
        "b2o": masters["b2o"].reshape(1),             # scalar bias, lives in SMEM
        # stub feature-extractor projections (plain-JAX glue)
        "Wh": rn(ks[16], (dh, D_EUH)),
        "Wt": rn(ks[17], (dt, D_EC)),
        "Wg": rn(ks[18], (dg, D_EUL)),
    }
    return params, masters


def _features(x_history, x_target, x_global, params):
    """Stub feature extractors + concat + flatten; emits the kernel's bf16 activation feed."""
    B, T, _ = x_history.shape
    # TODO(synk): UserInvariantInterestModel / UserInstantInterestModel definitions were not
    # provided; stubbed as tanh(linear) feature extractors (plain-JAX glue).
    eu_H = jnp.tanh(jnp.einsum("btd,df->btf", x_history, params["Wh"]))          # (B, T, 40)
    ec   = jnp.tanh(jnp.einsum("btd,df->btf", x_target,  params["Wt"]))          # (B, T, 40)
    eu_L = jnp.tanh(x_global @ params["Wg"])[:, None, :]                         # (B, 1, 48)
    eu_L = jnp.broadcast_to(eu_L, (B, T, D_EUL))                                 # (B, T, 48)
    # TODO(synk): the 40/48/40 concat could be fused into the kernel (three inputs written
    # into lane sub-ranges of a VMEM scratch), removing the materialized (N,128) e_concat
    # from HBM entirely; kept as XLA glue because the widths are not 128-aligned.
    e_concat = jnp.concatenate((eu_H, eu_L, ec), axis=2)                         # (B, T, 128)
    # bf16 feed halves the dominant HBM read; the MXU consumes bf16 anyway.
    return e_concat.reshape(B * T, F).astype(jnp.bfloat16)


def user_model_forward(x_history, x_target, x_global, params):
    B, T, _ = x_history.shape
    e_flat = _features(x_history, x_target, x_global, params)        # (B*T, 128) bf16
    r = user_model_pallas(e_flat, params)                            # (B*T,) f32
    return r.reshape(B, T)


def _kernel_math_reference(e_bf16, p):
    """Pure-JAX mirror of the kernel's exact fold/cast structure (tight-tolerance check)."""
    f32, bf16 = jnp.float32, jnp.bfloat16
    layer1 = lambda x, w, b: jnp.maximum(
        jnp.dot(x, w, preferred_element_type=f32) + b, 0.0).astype(bf16)
    layer2 = lambda x, w, b: jnp.dot(x, w, preferred_element_type=f32) + b
    g = layer2(layer1(e_bf16, p["w1g"], p["b1g"]), p["w2g"], p["b2g"])
    h = (g * e_bf16.astype(f32)).astype(bf16)
    m = layer2(layer1(h, p["w1m"], p["b1m"]), p["w2m"], p["b2m"]).astype(bf16)
    z = layer1(m, p["w1o"], p["b1o"])
    r = jnp.dot(z, p["w2o"].T, preferred_element_type=f32) + p["b2o"]
    return r.reshape(-1)


def _original_math_reference(e_bf16, masters):
    """Original module math in f32 with unfolded master weights (loose semantic check)."""
    e = e_bf16.astype(jnp.float32)
    relu = lambda a: jnp.maximum(a, 0.0)
    mlp = lambda x, w1, b1, w2, b2: relu(x @ w1 + b1) @ w2 + b2
    ctx = e * masters["bn_scale"] + masters["bn_bias"]          # BatchNorm1d (eval mode)
    g = mlp(ctx, masters["w1g"], masters["b1g"], masters["w2g"], masters["b2g"])
    m = mlp(g * e, masters["w1m"], masters["b1m"], masters["w2m"], masters["b2m"])
    r = relu(m @ masters["w1o"] + masters["b1o"]) @ masters["w2o"].T + masters["b2o"]
    return r.reshape(-1)


if __name__ == "__main__":
    key = jax.random.PRNGKey(0)
    kp, kh, kt, kg = jax.random.split(key, 4)
    B, T, DH, DT, DG = 2, 8, 16, 16, 16
    params, masters = init_params(kp, DH, DT, DG)
    x_history = jax.random.normal(kh, (B, T, DH), dtype=jnp.float32)
    x_target  = jax.random.normal(kt, (B, T, DT), dtype=jnp.float32)
    x_global  = jax.random.normal(kg, (B, DG),    dtype=jnp.float32)

    fwd = jax.jit(user_model_forward)
    r = fwd(x_history, x_target, x_global, params)
    jax.block_until_ready(r)
    assert r.shape == (B, T) and r.dtype == jnp.float32

    e_bf = _features(x_history, x_target, x_global, params)
    r_tight = _kernel_math_reference(e_bf, params).reshape(B, T)
    r_loose = _original_math_reference(e_bf, masters).reshape(B, T)
    err_tight = float(jnp.max(jnp.abs(r - r_tight)))
    err_loose = float(jnp.max(jnp.abs(r - r_loose)))
    assert err_tight < 5e-3, f"kernel vs bf16-matched reference: max abs err {err_tight}"
    assert err_loose < 5e-2, f"kernel vs f32 original-math reference: max abs err {err_loose}"
    print("KERNEL_OK")
</pallas_src>

<mosaic_0001>
module attributes {stable_mosaic.version = 11 : i64} {
  func.func @_user_model_kernel(%arg0: i32, %arg1: memref<128x128xbf16, #tpu.memory_space<vmem>>, %arg2: memref<128x128xbf16, #tpu.memory_space<vmem>>, %arg3: memref<1x128xf32, #tpu.memory_space<vmem>>, %arg4: memref<128x128xbf16, #tpu.memory_space<vmem>>, %arg5: memref<1x128xf32, #tpu.memory_space<vmem>>, %arg6: memref<128x128xbf16, #tpu.memory_space<vmem>>, %arg7: memref<1x128xf32, #tpu.memory_space<vmem>>, %arg8: memref<128x128xbf16, #tpu.memory_space<vmem>>, %arg9: memref<1x128xf32, #tpu.memory_space<vmem>>, %arg10: memref<128x128xbf16, #tpu.memory_space<vmem>>, %arg11: memref<1x128xf32, #tpu.memory_space<vmem>>, %arg12: memref<1x128xbf16, #tpu.memory_space<vmem>>, %arg13: memref<1xf32, #tpu.memory_space<smem>>, %arg14: memref<1x1x128xf32, #tpu.memory_space<vmem>>) attributes {dimension_semantics = [#tpu.dimension_semantics<parallel>], iteration_bounds = array<i64: 1>, scalar_prefetch = 0 : i64, scratch_operands = 0 : i64, tpu.core_type = #tpu.core_type<tc>, window_params = [{transform_indices = @transform_0, window_bounds = array<i64: 128, 128>}, {pipeline_mode = #tpu.pipeline_mode<synchronous>, transform_indices = @transform_1, window_bounds = array<i64: 128, 128>}, {pipeline_mode = #tpu.pipeline_mode<synchronous>, transform_indices = @transform_2, window_bounds = array<i64: 1, 128>}, {pipeline_mode = #tpu.pipeline_mode<synchronous>, transform_indices = @transform_3, window_bounds = array<i64: 128, 128>}, {pipeline_mode = #tpu.pipeline_mode<synchronous>, transform_indices = @transform_4, window_bounds = array<i64: 1, 128>}, {pipeline_mode = #tpu.pipeline_mode<synchronous>, transform_indices = @transform_5, window_bounds = array<i64: 128, 128>}, {pipeline_mode = #tpu.pipeline_mode<synchronous>, transform_indices = @transform_6, window_bounds = array<i64: 1, 128>}, {pipeline_mode = #tpu.pipeline_mode<synchronous>, transform_indices = @transform_7, window_bounds = array<i64: 128, 128>}, {pipeline_mode = #tpu.pipeline_mode<synchronous>, transform_indices = @transform_8, window_bounds = array<i64: 1, 128>}, {pipeline_mode = #tpu.pipeline_mode<synchronous>, transform_indices = @transform_9, window_bounds = array<i64: 128, 128>}, {pipeline_mode = #tpu.pipeline_mode<synchronous>, transform_indices = @transform_10, window_bounds = array<i64: 1, 128>}, {pipeline_mode = #tpu.pipeline_mode<synchronous>, transform_indices = @transform_11, window_bounds = array<i64: 1, 128>}, {transform_indices = @transform_12, window_bounds = array<i64: 1>}, {transform_indices = @transform_13, window_bounds = array<i64: 1, 1, 128>}]} {
    %c0 = arith.constant 0 : index
    %c0_0 = arith.constant 0 : index
    %0 = vector.load %arg1[%c0, %c0_0] : memref<128x128xbf16, #tpu.memory_space<vmem>>, vector<128x128xbf16>
    %c0_1 = arith.constant 0 : index
    %c0_2 = arith.constant 0 : index
    %1 = vector.load %arg2[%c0_1, %c0_2] : memref<128x128xbf16, #tpu.memory_space<vmem>>, vector<128x128xbf16>
    %cst = arith.constant dense<0.000000e+00> : vector<128x128xf32>
    %2 = tpu.matmul %0, %1, %cst {dimension_numbers = #tpu.dot_dimension_numbers<[1], [0], [0], [1], [0, 0, 1, 1], [], []>} : vector<128x128xbf16>, vector<128x128xbf16>, vector<128x128xf32> -> vector<128x128xf32>
    %c0_3 = arith.constant 0 : index
    %c0_4 = arith.constant 0 : index
    %3 = vector.load %arg3[%c0_3, %c0_4] : memref<1x128xf32, #tpu.memory_space<vmem>>, vector<1x128xf32>
    %4 = vector.broadcast %3 : vector<1x128xf32> to vector<128x128xf32>
    %5 = arith.addf %2, %4 : vector<128x128xf32>
    %cst_5 = arith.constant 0.000000e+00 : f32
    %6 = vector.broadcast %cst_5 : f32 to vector<128x128xf32>
    %7 = arith.maximumf %5, %6 : vector<128x128xf32>
    %8 = arith.truncf %7 : vector<128x128xf32> to vector<128x128xbf16>
    %c0_6 = arith.constant 0 : index
    %c0_7 = arith.constant 0 : index
    %9 = vector.load %arg4[%c0_6, %c0_7] : memref<128x128xbf16, #tpu.memory_space<vmem>>, vector<128x128xbf16>
    %cst_8 = arith.constant dense<0.000000e+00> : vector<128x128xf32>
    %10 = tpu.matmul %8, %9, %cst_8 {dimension_numbers = #tpu.dot_dimension_numbers<[1], [0], [0], [1], [0, 0, 1, 1], [], []>} : vector<128x128xbf16>, vector<128x128xbf16>, vector<128x128xf32> -> vector<128x128xf32>
    %c0_9 = arith.constant 0 : index
    %c0_10 = arith.constant 0 : index
    %11 = vector.load %arg5[%c0_9, %c0_10] : memref<1x128xf32, #tpu.memory_space<vmem>>, vector<1x128xf32>
    %12 = vector.broadcast %11 : vector<1x128xf32> to vector<128x128xf32>
    %13 = arith.addf %10, %12 : vector<128x128xf32>
    %14 = arith.extf %0 : vector<128x128xbf16> to vector<128x128xf32>
    %15 = arith.mulf %13, %14 : vector<128x128xf32>
    %16 = arith.truncf %15 : vector<128x128xf32> to vector<128x128xbf16>
    %c0_11 = arith.constant 0 : index
    %c0_12 = arith.constant 0 : index
    %17 = vector.load %arg6[%c0_11, %c0_12] : memref<128x128xbf16, #tpu.memory_space<vmem>>, vector<128x128xbf16>
    %cst_13 = arith.constant dense<0.000000e+00> : vector<128x128xf32>
    %18 = tpu.matmul %16, %17, %cst_13 {dimension_numbers = #tpu.dot_dimension_numbers<[1], [0], [0], [1], [0, 0, 1, 1], [], []>} : vector<128x128xbf16>, vector<128x128xbf16>, vector<128x128xf32> -> vector<128x128xf32>
    %c0_14 = arith.constant 0 : index
    %c0_15 = arith.constant 0 : index
    %19 = vector.load %arg7[%c0_14, %c0_15] : memref<1x128xf32, #tpu.memory_space<vmem>>, vector<1x128xf32>
    %20 = vector.broadcast %19 : vector<1x128xf32> to vector<128x128xf32>
    %21 = arith.addf %18, %20 : vector<128x128xf32>
    %cst_16 = arith.constant 0.000000e+00 : f32
    %22 = vector.broadcast %cst_16 : f32 to vector<128x128xf32>
    %23 = arith.maximumf %21, %22 : vector<128x128xf32>
    %24 = arith.truncf %23 : vector<128x128xf32> to vector<128x128xbf16>
    %c0_17 = arith.constant 0 : index
    %c0_18 = arith.constant 0 : index
    %25 = vector.load %arg8[%c0_17, %c0_18] : memref<128x128xbf16, #tpu.memory_space<vmem>>, vector<128x128xbf16>
    %cst_19 = arith.constant dense<0.000000e+00> : vector<128x128xf32>
    %26 = tpu.matmul %24, %25, %cst_19 {dimension_numbers = #tpu.dot_dimension_numbers<[1], [0], [0], [1], [0, 0, 1, 1], [], []>} : vector<128x128xbf16>, vector<128x128xbf16>, vector<128x128xf32> -> vector<128x128xf32>
    %c0_20 = arith.constant 0 : index
    %c0_21 = arith.constant 0 : index
    %27 = vector.load %arg9[%c0_20, %c0_21] : memref<1x128xf32, #tpu.memory_space<vmem>>, vector<1x128xf32>
    %28 = vector.broadcast %27 : vector<1x128xf32> to vector<128x128xf32>
    %29 = arith.addf %26, %28 : vector<128x128xf32>
    %30 = arith.truncf %29 : vector<128x128xf32> to vector<128x128xbf16>
    %c0_22 = arith.constant 0 : index
    %c0_23 = arith.constant 0 : index
    %31 = vector.load %arg10[%c0_22, %c0_23] : memref<128x128xbf16, #tpu.memory_space<vmem>>, vector<128x128xbf16>
    %cst_24 = arith.constant dense<0.000000e+00> : vector<128x128xf32>
    %32 = tpu.matmul %30, %31, %cst_24 {dimension_numbers = #tpu.dot_dimension_numbers<[1], [0], [0], [1], [0, 0, 1, 1], [], []>} : vector<128x128xbf16>, vector<128x128xbf16>, vector<128x128xf32> -> vector<128x128xf32>
    %c0_25 = arith.constant 0 : index
    %c0_26 = arith.constant 0 : index
    %33 = vector.load %arg11[%c0_25, %c0_26] : memref<1x128xf32, #tpu.memory_space<vmem>>, vector<1x128xf32>
    %34 = vector.broadcast %33 : vector<1x128xf32> to vector<128x128xf32>
    %35 = arith.addf %32, %34 : vector<128x128xf32>
    %cst_27 = arith.constant 0.000000e+00 : f32
    %36 = vector.broadcast %cst_27 : f32 to vector<128x128xf32>
    %37 = arith.maximumf %35, %36 : vector<128x128xf32>
    %38 = arith.truncf %37 : vector<128x128xf32> to vector<128x128xbf16>
    %c0_28 = arith.constant 0 : index
    %c0_29 = arith.constant 0 : index
    %39 = vector.load %arg12[%c0_28, %c0_29] : memref<1x128xbf16, #tpu.memory_space<vmem>>, vector<1x128xbf16>
    %cst_30 = arith.constant dense<0.000000e+00> : vector<1x128xf32>
    %40 = tpu.matmul %39, %38, %cst_30 {dimension_numbers = #tpu.dot_dimension_numbers<[1], [1], [0], [0], [0, 0, 1, 0], [], []>} : vector<1x128xbf16>, vector<128x128xbf16>, vector<1x128xf32> -> vector<1x128xf32>
    %c0_31 = arith.constant 0 : index
    %41 = memref.load %arg13[%c0_31] : memref<1xf32, #tpu.memory_space<smem>>
    %42 = vector.broadcast %41 : f32 to vector<1x128xf32>
    %43 = arith.addf %40, %42 : vector<1x128xf32>
    %c0_32 = arith.constant 0 : index
    %c0_33 = arith.constant 0 : index
    %c0_34 = arith.constant 0 : index
    %44 = vector.load %arg14[%c0_32, %c0_33, %c0_34] : memref<1x1x128xf32, #tpu.memory_space<vmem>>, vector<1x1x128xf32>
    %45 = vector.shape_cast %44 : vector<1x1x128xf32> to vector<1x128xf32>
    %46 = vector.shape_cast %43 : vector<1x128xf32> to vector<1x1x128xf32>
    tpu.vector_store %arg14[%c0_32, %c0_33, %c0_34], %46 {strides = array<i32>} : memref<1x1x128xf32, #tpu.memory_space<vmem>>, vector<1x1x128xf32>,
    return
  }
  func.func @transform_0(%arg0: i32) -> (i32, i32) {
    %c0_i32 = arith.constant 0 : i32
    %c0_i32_0 = arith.constant 0 : i32
    return %arg0, %c0_i32 : i32, i32
  }
  func.func @transform_1(%arg0: i32) -> (i32, i32) {
    %c0_i32 = arith.constant 0 : i32
    %c0_i32_0 = arith.constant 0 : i32
    %c0_i32_1 = arith.constant 0 : i32
    return %c0_i32, %c0_i32_0 : i32, i32
  }
  func.func @transform_2(%arg0: i32) -> (i32, i32) {
    %c0_i32 = arith.constant 0 : i32
    %c0_i32_0 = arith.constant 0 : i32
    %c0_i32_1 = arith.constant 0 : i32
    return %c0_i32, %c0_i32_0 : i32, i32
  }
  func.func @transform_3(%arg0: i32) -> (i32, i32) {
    %c0_i32 = arith.constant 0 : i32
    %c0_i32_0 = arith.constant 0 : i32
    %c0_i32_1 = arith.constant 0 : i32
    return %c0_i32, %c0_i32_0 : i32, i32
  }
  func.func @transform_4(%arg0: i32) -> (i32, i32) {
    %c0_i32 = arith.constant 0 : i32
    %c0_i32_0 = arith.constant 0 : i32
    %c0_i32_1 = arith.constant 0 : i32
    return %c0_i32, %c0_i32_0 : i32, i32
  }
  func.func @transform_5(%arg0: i32) -> (i32, i32) {
    %c0_i32 = arith.constant 0 : i32
    %c0_i32_0 = arith.constant 0 : i32
    %c0_i32_1 = arith.constant 0 : i32
    return %c0_i32, %c0_i32_0 : i32, i32
  }
  func.func @transform_6(%arg0: i32) -> (i32, i32) {
    %c0_i32 = arith.constant 0 : i32
    %c0_i32_0 = arith.constant 0 : i32
    %c0_i32_1 = arith.constant 0 : i32
    return %c0_i32, %c0_i32_0 : i32, i32
  }
  func.func @transform_7(%arg0: i32) -> (i32, i32) {
    %c0_i32 = arith.constant 0 : i32
    %c0_i32_0 = arith.constant 0 : i32
    %c0_i32_1 = arith.constant 0 : i32
    return %c0_i32, %c0_i32_0 : i32, i32
  }
  func.func @transform_8(%arg0: i32) -> (i32, i32) {
    %c0_i32 = arith.constant 0 : i32
    %c0_i32_0 = arith.constant 0 : i32
    %c0_i32_1 = arith.constant 0 : i32
    return %c0_i32, %c0_i32_0 : i32, i32
  }
  func.func @transform_9(%arg0: i32) -> (i32, i32) {
    %c0_i32 = arith.constant 0 : i32
    %c0_i32_0 = arith.constant 0 : i32
    %c0_i32_1 = arith.constant 0 : i32
    return %c0_i32, %c0_i32_0 : i32, i32
  }
  func.func @transform_10(%arg0: i32) -> (i32, i32) {
    %c0_i32 = arith.constant 0 : i32
    %c0_i32_0 = arith.constant 0 : i32
    %c0_i32_1 = arith.constant 0 : i32
    return %c0_i32, %c0_i32_0 : i32, i32
  }
  func.func @transform_11(%arg0: i32) -> (i32, i32) {
    %c0_i32 = arith.constant 0 : i32
    %c0_i32_0 = arith.constant 0 : i32
    %c0_i32_1 = arith.constant 0 : i32
    return %c0_i32, %c0_i32_0 : i32, i32
  }
  func.func @transform_12(%arg0: i32) -> i32 {
    %c0_i32 = arith.constant 0 : i32
    %c0_i32_0 = arith.constant 0 : i32
    return %c0_i32 : i32
  }
  func.func @transform_13(%arg0: i32) -> (i32, i32, i32) {
    %c0_i32 = arith.constant 0 : i32
    %c0_i32_0 = arith.constant 0 : i32
    %c0_i32_1 = arith.constant 0 : i32
    return %arg0, %c0_i32, %c0_i32_0 : i32, i32, i32
  }
}

</mosaic_0001>

<bundles_post_ra>
// kernel: user_model_forward.1
= control target key start
LH: loop header
LB: loop body
LE: loop exit
PB: predicated region body
PF: predicated region fallthrough
CT: control target
= control target key end

     0   :  { %19 = vsyncpa [#allocation4], 0  ;;  %s1464_s0 = inlined_call_operand.vmem [shape: bf16[128,128], index: 0, kind: input, shape index: {}]   ;;  %s1465_s1 = inlined_call_operand.vmem [shape: bf16[128,128], index: 1, kind: input, shape index: {}]   ;;  %s1466_s2 = inlined_call_operand.vmem [shape: f32[1,128], index: 2, kind: input, shape index: {}]   ;;  %s1467_s3 = inlined_call_operand.vmem [shape: bf16[128,128], index: 3, kind: input, shape index: {}]   ;;  %s1468_s4 = inlined_call_operand.vmem [shape: f32[1,128], index: 4, kind: input, shape index: {}]   ;;  %s1469_s5 = inlined_call_operand.vmem [shape: bf16[128,128], index: 5, kind: input, shape index: {}]   ;;  %s1470_s6 = inlined_call_operand.vmem [shape: f32[1,128], index: 6, kind: input, shape index: {}]   ;;  %s1471_s7 = inlined_call_operand.hbm [shape: bf16[128,128], index: 7, kind: input, shape index: {}]   ;;  %s1472_s8 = inlined_call_operand.vmem [shape: f32[1,128], index: 8, kind: input, shape index: {}]   ;;  %s1473_s9 = inlined_call_operand.hbm [shape: bf16[128,128], index: 9, kind: input, shape index: {}]   ;;  %s1474_s10 = inlined_call_operand.vmem [shape: f32[1,128], index: 10, kind: input, shape index: {}]   ;;  %s1475_s11 = inlined_call_operand.vmem [shape: bf16[1,128], index: 11, kind: input, shape index: {}]   ;;  %s1476_s12 = inlined_call_operand.<no memory space> [shape: f32[1], index: 12, kind: input, shape index: {}]   ;;  %s1477_s13 = inlined_call_operand.vmem [shape: f32[1,1,128], index: 13, kind: output, shape index: {}]  }
   0x1   :  { %s39_s27 = sshll.u32 %s1471_s7, 4  ;;  %s40_s27 = int_to_ptr.hbm [resolvable:$true] %s39_s27 }
   0x2   :  { %20 = vsyncpa [#allocation6], 0  ;;  %s1186_s28 = smov [#allocation3]   ;;  %s54_s15 = sshll.u32 %s1473_s9, 4  ;;  %s55_s15 = int_to_ptr.hbm [resolvable:$true] %s54_s15 }
   0x3   :  { %s41_s29 = sshll.u32 %s1186_s28, 4  ;;  %s1187_s16 = smov 64   ;;  %s42_s29 = int_to_ptr.vmem [resolvable:$true] %s41_s29 }
   0x4   :  { %s1188_s17 = smov 4   ;;  %s1189_s18 = smov [#allocation5]  }
   0x5   :  { %47 = dma.hbm_to_vmem [thread:$0]  %s40_s27, 1024, %s42_s29, [#allocation4], %s1187_s16, %s1187_s16, %s1188_s17  }
   0x6   :  { %s56_s19 = sshll.u32 %s1189_s18, 4  ;;  %s57_s19 = int_to_ptr.vmem [resolvable:$true] %s56_s19 }
   0x7   :  { %62 = dma.hbm_to_vmem [thread:$0]  %s55_s15, 1024, %s57_s19, [#allocation6], %s1187_s16, %s1187_s16, %s1188_s17  }
   0x8   :  { %1182 = dma.done.wait [#allocation4], 1024  }
   0x9   :  { %1183 = vsyncadd [#allocation4], 4294966272 }
   0xa   :  { %1184 = dma.done.wait [#allocation6], 1024  }
   0xb   :  { %1185 = vsyncadd [#allocation6], 4294966272  ;;  %v1076_v0 = vld [vmem:[%s1465_s1 + $0x38] sm:$0xff]  ;;  %v1075_v1 = vld [vmem:[%s1465_s1 + $0x30] sm:$0xff] }
   0xc   :  { %209 = vmatpush.bf16.msra.mxu0 %v1076_v0  ;;  %1109 = vmatpush.bf16.msra.mxu2 %v1076_v0  ;;  %v1074_v2 = vld [vmem:[%s1465_s1 + $0x28] sm:$0xff]  ;;  %v1073_v3 = vld [vmem:[%s1465_s1 + $0x20] sm:$0xff]  ;;  %v1072_v4 = vld [vmem:[%s1465_s1 + $0x18] sm:$0xff] }
   0xd   :  { %1110 = vmatpush.bf16.msra.mxu3 %v1076_v0  ;;  %v1071_v5 = vld [vmem:[%s1465_s1 + $0x10] sm:$0xff]  ;;  %v1070_v6 = vld [vmem:[%s1465_s1 + $0x8] sm:$0xff]  ;;  %v1069_v7 = vld [vmem:[%s1465_s1] sm:$0xff] }
   0xe   :  { %v1061_v8 = vld [vmem:[%s1464_s0] sm:$0xff]  ;;  %v1064_v9 = vld [vmem:[%s1464_s0 + $0x18] sm:$0xff]  ;;  %v1066_v10 = vld [vmem:[%s1464_s0 + $0x28] sm:$0xff] }
   0xf   :  { %v1084_v11 = vld [vmem:[%s1467_s3 + $0x38] sm:$0xff]  ;;  %v1083_v12 = vld [vmem:[%s1467_s3 + $0x30] sm:$0xff]  ;;  %v1082_v13 = vld [vmem:[%s1467_s3 + $0x28] sm:$0xff] }
  0x10   :  { %210 = vmatpush.bf16.msra.mxu0 %v1075_v1  ;;  %1111 = vmatpush.bf16.msra.mxu2 %v1075_v1  ;;  %v1062_v14 = vld [vmem:[%s1464_s0 + $0x8] sm:$0xff]  ;;  %v1081_v15 = vld [vmem:[%s1467_s3 + $0x20] sm:$0xff]  ;;  %v1067_v17 = vld [vmem:[%s1464_s0 + $0x30] sm:$0xff] }
  0x11   :  { %1112 = vmatpush.bf16.msra.mxu3 %v1075_v1  ;;  %350 = vmatpush.bf16.msra.mxu1 %v1084_v11  ;;  %v1065_v16 = vld [vmem:[%s1464_s0 + $0x20] sm:$0xff]  ;;  %v1063_v18 = vld [vmem:[%s1464_s0 + $0x10] sm:$0xff]  ;;  %v1068_v19 = vld [vmem:[%s1464_s0 + $0x38] sm:$0xff] }
  0x12   :  { %v1080_v20 = vld [vmem:[%s1467_s3 + $0x18] sm:$0xff]  ;;  %v1079_v21 = vld [vmem:[%s1467_s3 + $0x10] sm:$0xff]  ;;  %v1078_v22 = vld [vmem:[%s1467_s3 + $0x8] sm:$0xff] }
  0x13   :  { %v1077_v23 = vld [vmem:[%s1467_s3] sm:$0xff]  ;;  %v1092_v62 = vld [vmem:[%s1469_s5 + $0x38] sm:$0xff] }
  0x14   :  { %211 = vmatpush.bf16.msra.mxu0 %v1074_v2  ;;  %1113 = vmatpush.bf16.msra.mxu2 %v1074_v2  ;;  %v1341_v25 = vld [vmem:[%s1466_s2] ss:$0 sm:$0xff] }
  0x15   :  { %1114 = vmatpush.bf16.msra.mxu3 %v1074_v2  ;;  %351 = vmatpush.bf16.msra.mxu1 %v1083_v12 }
  0x18   :  { %212 = vmatpush.bf16.msra.mxu0 %v1073_v3  ;;  %1115 = vmatpush.bf16.msra.mxu2 %v1073_v3 }
  0x19   :  { %1116 = vmatpush.bf16.msra.mxu3 %v1073_v3  ;;  %352 = vmatpush.bf16.msra.mxu1 %v1082_v13 }
  0x1c   :  { %213 = vmatpush.bf16.msra.mxu0 %v1072_v4  ;;  %1117 = vmatpush.bf16.msra.mxu2 %v1072_v4 }
  0x1d   :  { %1118 = vmatpush.bf16.msra.mxu3 %v1072_v4  ;;  %353 = vmatpush.bf16.msra.mxu1 %v1081_v15 }
  0x20   :  { %214 = vmatpush.bf16.msra.mxu0 %v1071_v5  ;;  %1119 = vmatpush.bf16.msra.mxu2 %v1071_v5 }
  0x21   :  { %1120 = vmatpush.bf16.msra.mxu3 %v1071_v5  ;;  %354 = vmatpush.bf16.msra.mxu1 %v1080_v20 }
  0x24   :  { %215 = vmatpush.bf16.msra.mxu0 %v1070_v6  ;;  %1121 = vmatpush.bf16.msra.mxu2 %v1070_v6 }
  0x25   :  { %1122 = vmatpush.bf16.msra.mxu3 %v1070_v6  ;;  %355 = vmatpush.bf16.msra.mxu1 %v1079_v21  ;;  %v1091_v6 = vld [vmem:[%s1469_s5 + $0x30] sm:$0xff]  ;;  %v1085_v21 = vld [vmem:[%s1469_s5] sm:$0xff] }
  0x28   :  { %216 = vmatpush.bf16.msra.mxu0 %v1069_v7  ;;  %1123 = vmatpush.bf16.msra.mxu2 %v1069_v7 }
  0x29   :  { %1124 = vmatpush.bf16.msra.mxu3 %v1069_v7  ;;  %356 = vmatpush.bf16.msra.mxu1 %v1078_v22  ;;  %v1090_v7 = vld [vmem:[%s1469_s5 + $0x28] sm:$0xff] }
  0x2b   :  { %217 = vmatmul.bf16.vlgmr.msra.gmra.mxu0 %v1061_v8  ;;  %232 = vmatmul.bf16.vlgmr.msra.gmra.mxu2 %v1064_v9  ;;  %v1089_v8 = vld [vmem:[%s1469_s5 + $0x20] sm:$0xff] }
  0x2c   :  { %242 = vmatmul.bf16.vlgmr.msra.gmra.mxu3 %v1066_v10  ;;  %507 = vmatpush.bf16.msrb.mxu2 %v1092_v62 }
  0x2d   :  { %357 = vmatpush.bf16.msra.mxu1 %v1077_v23 }
  0x30   :  { %508 = vmatpush.bf16.msrb.mxu2 %v1091_v6 }
  0x34   :  { %509 = vmatpush.bf16.msrb.mxu2 %v1090_v7 }
  0x38   :  { %510 = vmatpush.bf16.msrb.mxu2 %v1089_v8 }
  0x3b   :  { %222 = vmatmul.bf16.gmra.mxu0 %v1062_v14  ;;  %237 = vmatmul.bf16.gmra.mxu2 %v1065_v16  ;;  %v1088_v14 = vld [vmem:[%s1469_s5 + $0x18] sm:$0xff]  ;;  %v1087_v16 = vld [vmem:[%s1469_s5 + $0x10] sm:$0xff] }
  0x3c   :  { %247 = vmatmul.bf16.gmra.mxu3 %v1067_v17  ;;  %511 = vmatpush.bf16.msrb.mxu2 %v1088_v14 }
  0x40   :  { %512 = vmatpush.bf16.msrb.mxu2 %v1087_v16 }
  0x4b   :  { %227 = vmatmul.bf16.gmra.mxu0 %v1063_v18  ;;  %v1086_v18 = vld [vmem:[%s1469_s5 + $0x8] sm:$0xff] }
  0x4c   :  { %252 = vmatmul.bf16.gmra.mxu3 %v1068_v19  ;;  %513 = vmatpush.bf16.msrb.mxu2 %v1086_v18 }
  0x50   :  { %514 = vmatpush.bf16.msrb.mxu2 %v1085_v21 }
  0xa8   :  { %v218_v24 = vpop.f32.mrf.mxu0 }
  0xa9   :  { %v219_v26 = vadd.f32 %v1341_v25, %v218_v24 }
  0xab   :  { %v258_v29 = vmax.f32 %v219_v26, 0.0 }
  0xae   :  { %v233_v40 = vpop.f32.mrf.mxu2 }
  0xaf   :  { %v234_v48 = vadd.f32 %v1341_v25, %v233_v40  ;;  %v243_v54 = vpop.f32.mrf.mxu3 }
  0xb0   :  { %v220_v27 = vpop.f32.mrf.mxu0  ;;  %v244_v0 = vadd.f32 %v1341_v25, %v243_v54 }
  0xb1   :  { %v221_v28 = vadd.f32 %v1341_v25, %v220_v27  ;;  %v264_v51 = vmax.f32 %v234_v48, 0.0  ;;  %v1386_v27 = vld [vmem:[%s1468_s4] ss:$0 sm:$0xff] }
  0xb2   :  { %v268_v2 = vmax.f32 %v244_v0, 0.0 }
  0xb3   :  { %v259_v30 = vmax.f32 %v221_v28, 0.0  ;;  %v77_v28 = vld [vmem:[%s1464_s0] sm:$0xff]  }
  0xb5   :  { %v274_v31 = vpack.c.bf16 %v259_v30, %v258_v29  ;;  %v399_v29 = vunpack.c.l.bf16 %v77_v28  ;;  %v400_v30 = vunpack.c.h.bf16 %v77_v28  ;;  %v1098_v28 = vld [vmem:[#allocation3 + $0x28] sm:$0xff] }
  0xb6   :  { %v235_v47 = vpop.f32.mrf.mxu2 }
  0xb7   :  { %358 = vmatmul.bf16.vlgmr.msra.gmra.mxu1 %v274_v31  ;;  %v236_v49 = vadd.f32 %v1341_v25, %v235_v47  ;;  %v245_v60 = vpop.f32.mrf.mxu3  ;;  %v81_v47 = vld [vmem:[%s1464_s0 + $0x10] sm:$0xff]  }
  0xb8   :  { %v223_v32 = vpop.f32.mrf.mxu0  ;;  %v246_v1 = vadd.f32 %v1341_v25, %v245_v60 }
  0xb9   :  { %v224_v33 = vadd.f32 %v1341_v25, %v223_v32  ;;  %v265_v52 = vmax.f32 %v236_v49, 0.0  ;;  %v403_v49 = vunpack.c.l.bf16 %v81_v47 }
  0xba   :  { %v269_v3 = vmax.f32 %v246_v1, 0.0 }
  0xbb   :  { %v260_v36 = vmax.f32 %v224_v33, 0.0  ;;  %v277_v53 = vpack.c.bf16 %v265_v52, %v264_v51 }
  0xbc   :  { %v279_v4 = vpack.c.bf16 %v269_v3, %v268_v2  ;;  %v85_v3 = vld [vmem:[%s1464_s0 + $0x20] sm:$0xff]  }
  0xbd   :  { %v408_v6 = vunpack.c.h.bf16 %v85_v3 }
  0xbe   :  { %v238_v50 = vpop.f32.mrf.mxu2 }
  0xbf   :  { %v239_v56 = vadd.f32 %v1341_v25, %v238_v50  ;;  %v248_v63 = vpop.f32.mrf.mxu3  ;;  %v404_v50 = vunpack.c.h.bf16 %v81_v47 }
  0xc0   :  { %v225_v34 = vpop.f32.mrf.mxu0  ;;  %v249_v9 = vadd.f32 %v1341_v25, %v248_v63 }
  0xc1   :  { %v226_v35 = vadd.f32 %v1341_v25, %v225_v34  ;;  %v266_v58 = vmax.f32 %v239_v56, 0.0 }
  0xc2   :  { %v270_v12 = vmax.f32 %v249_v9, 0.0 }
  0xc3   :  { %v261_v37 = vmax.f32 %v226_v35, 0.0 }
  0xc5   :  { %v275_v38 = vpack.c.bf16 %v261_v37, %v260_v36  ;;  %v79_v37 = vld [vmem:[%s1464_s0 + $0x8] sm:$0xff]  }
  0xc6   :  { %v240_v55 = vpop.f32.mrf.mxu2  ;;  %v402_v40 = vunpack.c.h.bf16 %v79_v37 }
  0xc7   :  { %363 = vmatmul.bf16.gmra.mxu1 %v275_v38  ;;  %v241_v57 = vadd.f32 %v1341_v25, %v240_v55  ;;  %v250_v5 = vpop.f32.mrf.mxu3 }
  0xc8   :  { %v228_v39 = vpop.f32.mrf.mxu0  ;;  %v251_v10 = vadd.f32 %v1341_v25, %v250_v5  ;;  %v407_v5 = vunpack.c.l.bf16 %v85_v3 }
  0xc9   :  { %v229_v41 = vadd.f32 %v1341_v25, %v228_v39  ;;  %v267_v59 = vmax.f32 %v241_v57, 0.0  ;;  %v401_v39 = vunpack.c.l.bf16 %v79_v37  ;;  %v83_v57 = vld [vmem:[%s1464_s0 + $0x18] sm:$0xff]  }
  0xca   :  { %v271_v13 = vmax.f32 %v251_v10, 0.0  ;;  %v406_v60 = vunpack.c.h.bf16 %v83_v57 }
  0xcb   :  { %v262_v44 = vmax.f32 %v229_v41, 0.0  ;;  %v278_v61 = vpack.c.bf16 %v267_v59, %v266_v58  ;;  %v405_v59 = vunpack.c.l.bf16 %v83_v57 }
  0xcc   :  { %v280_v15 = vpack.c.bf16 %v271_v13, %v270_v12  ;;  %v87_v13 = vld [vmem:[%s1464_s0 + $0x28] sm:$0xff]  }
  0xcd   :  { %v410_v16 = vunpack.c.h.bf16 %v87_v13 }
  0xcf   :  { %v253_v11 = vpop.f32.mrf.mxu3 }
  0xd0   :  { %v230_v42 = vpop.f32.mrf.mxu0  ;;  %v254_v19 = vadd.f32 %v1341_v25, %v253_v11 }
  0xd1   :  { %v231_v43 = vadd.f32 %v1341_v25, %v230_v42 }
  0xd2   :  { %v272_v22 = vmax.f32 %v254_v19, 0.0 }
  0xd3   :  { %v263_v45 = vmax.f32 %v231_v43, 0.0 }
  0xd5   :  { %v276_v46 = vpack.c.bf16 %v263_v45, %v262_v44 }
  0xd7   :  { %368 = vmatmul.bf16.gmra.mxu1 %v276_v46  ;;  %v255_v17 = vpop.f32.mrf.mxu3 }
  0xd8   :  { %v256_v20 = vadd.f32 %v1341_v25, %v255_v17 }
  0xda   :  { %v273_v23 = vmax.f32 %v256_v20, 0.0 }
  0xdc   :  { %v281_v24 = vpack.c.bf16 %v273_v23, %v272_v22  ;;  %v1100_v22 = vld [vmem:[#allocation3 + $0x38] sm:$0xff] }
  0xdd   :  { %648 = vmatpush.bf16.msrb.mxu3 %v1100_v22 }
  0xe7   :  { %373 = vmatmul.bf16.gmra.mxu1 %v277_v53 }
  0xf7   :  { %378 = vmatmul.bf16.gmra.mxu1 %v278_v61 }
 0x107   :  { %383 = vmatmul.bf16.gmra.mxu1 %v279_v4 }
 0x117   :  { %388 = vmatmul.bf16.gmra.mxu1 %v280_v15  ;;  %v409_v15 = vunpack.c.l.bf16 %v87_v13 }
 0x127   :  { %393 = vmatmul.bf16.gmra.mxu1 %v281_v24  ;;  %v1099_v24 = vld [vmem:[#allocation3 + $0x30] sm:$0xff] }
 0x128   :  { %649 = vmatpush.bf16.msrb.mxu3 %v1099_v24 }
 0x12c   :  { %650 = vmatpush.bf16.msrb.mxu3 %v1098_v28 }
 0x134   :  { %v359_v26 = vpop.f32.mrf.mxu1 }
 0x135   :  { %v360_v25 = vadd.f32 %v1386_v27, %v359_v26  ;;  %v89_v26 = vld [vmem:[%s1464_s0 + $0x30] sm:$0xff]  }
 0x137   :  { %v415_v33 = vmul.f32 %v399_v29, %v360_v25  ;;  %v411_v29 = vunpack.c.l.bf16 %v89_v26 }
 0x13c   :  { %v361_v31 = vpop.f32.mrf.mxu1 }
 0x13d   :  { %v362_v32 = vadd.f32 %v1386_v27, %v361_v31 }
 0x13f   :  { %v416_v34 = vmul.f32 %v400_v30, %v362_v32  ;;  %v412_v30 = vunpack.c.h.bf16 %v89_v26 }
 0x141   :  { %v431_v35 = vpack.c.bf16 %v416_v34, %v415_v33  ;;  %v1097_v33 = vld [vmem:[#allocation3 + $0x20] sm:$0xff] }
 0x142   :  { %651 = vmatpush.bf16.msrb.mxu3 %v1097_v33  ;;  %v1106_v33 = vld [vmem:[#allocation5 + $0x28] sm:$0xff] }
 0x143   :  { %515 = vmatmul.bf16.vlgmr.msrb.gmra.mxu2 %v431_v35 }
 0x144   :  { %v364_v36 = vpop.f32.mrf.mxu1 }
 0x145   :  { %v365_v38 = vadd.f32 %v1386_v27, %v364_v36 }
 0x147   :  { %v417_v43 = vmul.f32 %v401_v39, %v365_v38  ;;  %v1096_v38 = vld [vmem:[#allocation3 + $0x18] sm:$0xff] }
 0x148   :  { %652 = vmatpush.bf16.msrb.mxu3 %v1096_v38  ;;  %v91_v39 = vld [vmem:[%s1464_s0 + $0x38] sm:$0xff]  }
 0x14c   :  { %v366_v41 = vpop.f32.mrf.mxu1 }
 0x14d   :  { %v367_v42 = vadd.f32 %v1386_v27, %v366_v41 }
 0x14f   :  { %v418_v44 = vmul.f32 %v402_v40, %v367_v42  ;;  %v1095_v40 = vld [vmem:[#allocation3 + $0x10] sm:$0xff]  ;;  %v413_v42 = vunpack.c.l.bf16 %v91_v39 }
 0x150   :  { %653 = vmatpush.bf16.msrb.mxu3 %v1095_v40  ;;  %v1104_v40 = vld [vmem:[#allocation5 + $0x18] sm:$0xff] }
 0x151   :  { %v432_v45 = vpack.c.bf16 %v418_v44, %v417_v43  ;;  %v414_v43 = vunpack.c.h.bf16 %v91_v39 }
 0x153   :  { %520 = vmatmul.bf16.gmra.mxu2 %v432_v45  ;;  %v1094_v45 = vld [vmem:[#allocation3 + $0x8] sm:$0xff] }
 0x154   :  { %v369_v46 = vpop.f32.mrf.mxu1  ;;  %654 = vmatpush.bf16.msrb.mxu3 %v1094_v45 }
 0x155   :  { %v370_v48 = vadd.f32 %v1386_v27, %v369_v46 }
 0x157   :  { %v419_v53 = vmul.f32 %v403_v49, %v370_v48  ;;  %v1093_v49 = vld [vmem:[#allocation3] sm:$0xff] }
 0x158   :  { %655 = vmatpush.bf16.msrb.mxu3 %v1093_v49 }
 0x15c   :  { %v371_v51 = vpop.f32.mrf.mxu1 }
 0x15d   :  { %v372_v52 = vadd.f32 %v1386_v27, %v371_v51 }
 0x15f   :  { %v420_v54 = vmul.f32 %v404_v50, %v372_v52  ;;  %v1431_v52 = vld [vmem:[%s1470_s6] ss:$0 sm:$0xff] }
 0x161   :  { %v433_v55 = vpack.c.bf16 %v420_v54, %v419_v53 }
 0x163   :  { %525 = vmatmul.bf16.gmra.mxu2 %v433_v55 }
 0x164   :  { %v374_v56 = vpop.f32.mrf.mxu1 }
 0x165   :  { %v375_v58 = vadd.f32 %v1386_v27, %v374_v56 }
 0x167   :  { %v421_v63 = vmul.f32 %v405_v59, %v375_v58 }
 0x16c   :  { %v376_v61 = vpop.f32.mrf.mxu1 }
 0x16d   :  { %v377_v62 = vadd.f32 %v1386_v27, %v376_v61 }
 0x16f   :  { %v422_v0 = vmul.f32 %v406_v60, %v377_v62 }
 0x171   :  { %v434_v1 = vpack.c.bf16 %v422_v0, %v421_v63 }
 0x173   :  { %530 = vmatmul.bf16.gmra.mxu2 %v434_v1 }
 0x174   :  { %v379_v2 = vpop.f32.mrf.mxu1 }
 0x175   :  { %v380_v4 = vadd.f32 %v1386_v27, %v379_v2 }
 0x177   :  { %v423_v9 = vmul.f32 %v407_v5, %v380_v4 }
 0x17c   :  { %v381_v7 = vpop.f32.mrf.mxu1 }
 0x17d   :  { %v382_v8 = vadd.f32 %v1386_v27, %v381_v7 }
 0x17f   :  { %v424_v10 = vmul.f32 %v408_v6, %v382_v8 }
 0x181   :  { %v435_v11 = vpack.c.bf16 %v424_v10, %v423_v9 }
 0x183   :  { %535 = vmatmul.bf16.gmra.mxu2 %v435_v11 }
 0x184   :  { %v384_v12 = vpop.f32.mrf.mxu1 }
 0x185   :  { %v385_v14 = vadd.f32 %v1386_v27, %v384_v12 }
 0x187   :  { %v425_v19 = vmul.f32 %v409_v15, %v385_v14 }
 0x18c   :  { %v386_v17 = vpop.f32.mrf.mxu1 }
 0x18d   :  { %v387_v18 = vadd.f32 %v1386_v27, %v386_v17 }
 0x18f   :  { %v426_v20 = vmul.f32 %v410_v16, %v387_v18 }
 0x191   :  { %v436_v21 = vpack.c.bf16 %v426_v20, %v425_v19 }
 0x193   :  { %540 = vmatmul.bf16.gmra.mxu2 %v436_v21 }
 0x194   :  { %v389_v23 = vpop.f32.mrf.mxu1 }
 0x195   :  { %v390_v25 = vadd.f32 %v1386_v27, %v389_v23 }
 0x197   :  { %v427_v34 = vmul.f32 %v411_v29, %v390_v25 }
 0x19c   :  { %v391_v31 = vpop.f32.mrf.mxu1 }
 0x19d   :  { %v392_v32 = vadd.f32 %v1386_v27, %v391_v31 }
 0x19f   :  { %v428_v35 = vmul.f32 %v412_v30, %v392_v32  ;;  %v1108_v30 = vld [vmem:[#allocation5 + $0x38] sm:$0xff]  ;;  %v1107_v32 = vld [vmem:[#allocation5 + $0x30] sm:$0xff] }
 0x1a0   :  { %773 = vmatpush.bf16.msrb.mxu0 %v1108_v30  ;;  %v1133_v30 = vld [vmem:[%s1474_s10] ss:$0 sm:$0xff] }
 0x1a1   :  { %v437_v36 = vpack.c.bf16 %v428_v35, %v427_v34 }
 0x1a3   :  { %545 = vmatmul.bf16.gmra.mxu2 %v437_v36  ;;  %v1105_v36 = vld [vmem:[#allocation5 + $0x20] sm:$0xff] }
 0x1a4   :  { %v394_v37 = vpop.f32.mrf.mxu1  ;;  %774 = vmatpush.bf16.msrb.mxu0 %v1107_v32 }
 0x1a5   :  { %v395_v41 = vadd.f32 %v1386_v27, %v394_v37 }
 0x1a7   :  { %v429_v47 = vmul.f32 %v413_v42, %v395_v41 }
 0x1a8   :  { %775 = vmatpush.bf16.msrb.mxu0 %v1106_v33 }
 0x1ac   :  { %v396_v44 = vpop.f32.mrf.mxu1  ;;  %776 = vmatpush.bf16.msrb.mxu0 %v1105_v36 }
 0x1ad   :  { %v397_v46 = vadd.f32 %v1386_v27, %v396_v44  ;;  %v1102_v44 = vld [vmem:[#allocation5 + $0x8] sm:$0xff] }
 0x1af   :  { %v430_v48 = vmul.f32 %v414_v43, %v397_v46  ;;  %v1103_v43 = vld [vmem:[#allocation5 + $0x10] sm:$0xff] }
 0x1b0   :  { %777 = vmatpush.bf16.msrb.mxu0 %v1104_v40 }
 0x1b1   :  { %v438_v50 = vpack.c.bf16 %v430_v48, %v429_v47  ;;  %v1101_v48 = vld [vmem:[#allocation5] sm:$0xff] }
 0x1b3   :  { %550 = vmatmul.bf16.gmra.mxu2 %v438_v50 }
 0x1b4   :  { %778 = vmatpush.bf16.msrb.mxu0 %v1103_v43 }
 0x1b8   :  { %779 = vmatpush.bf16.msrb.mxu0 %v1102_v44 }
 0x1bc   :  { %780 = vmatpush.bf16.msrb.mxu0 %v1101_v48 }
 0x1c6   :  { %v516_v51 = vpop.f32.mrf.mxu2 }
 0x1c7   :  { %v517_v53 = vadd.f32 %v1431_v52, %v516_v51 }
 0x1c9   :  { %v556_v56 = vmax.f32 %v517_v53, 0.0 }
 0x1ce   :  { %v518_v54 = vpop.f32.mrf.mxu2 }
 0x1cf   :  { %v519_v55 = vadd.f32 %v1431_v52, %v518_v54  ;;  %v1132_v54 = vld [vmem:[%s1472_s8] ss:$0 sm:$0xff] }
 0x1d1   :  { %v557_v27 = vmax.f32 %v519_v55, 0.0 }
 0x1d3   :  { %v572_v57 = vpack.c.bf16 %v557_v27, %v556_v56 }
 0x1d5   :  { %656 = vmatmul.bf16.vlgmr.msrb.gmra.mxu3 %v572_v57 }
 0x1d6   :  { %v521_v58 = vpop.f32.mrf.mxu2 }
 0x1d7   :  { %v522_v59 = vadd.f32 %v1431_v52, %v521_v58 }
 0x1d9   :  { %v558_v62 = vmax.f32 %v522_v59, 0.0 }
 0x1de   :  { %v523_v60 = vpop.f32.mrf.mxu2 }
 0x1df   :  { %v524_v61 = vadd.f32 %v1431_v52, %v523_v60 }
 0x1e1   :  { %v559_v63 = vmax.f32 %v524_v61, 0.0 }
 0x1e3   :  { %v573_v0 = vpack.c.bf16 %v559_v63, %v558_v62 }
 0x1e5   :  { %661 = vmatmul.bf16.gmra.mxu3 %v573_v0 }
 0x1e6   :  { %v526_v1 = vpop.f32.mrf.mxu2 }
 0x1e7   :  { %v527_v2 = vadd.f32 %v1431_v52, %v526_v1 }
 0x1e9   :  { %v560_v5 = vmax.f32 %v527_v2, 0.0 }
 0x1ee   :  { %v528_v3 = vpop.f32.mrf.mxu2 }
 0x1ef   :  { %v529_v4 = vadd.f32 %v1431_v52, %v528_v3 }
 0x1f1   :  { %v561_v6 = vmax.f32 %v529_v4, 0.0 }
 0x1f3   :  { %v574_v7 = vpack.c.bf16 %v561_v6, %v560_v5 }
 0x1f5   :  { %666 = vmatmul.bf16.gmra.mxu3 %v574_v7 }
 0x1f6   :  { %v531_v8 = vpop.f32.mrf.mxu2 }
 0x1f7   :  { %v532_v9 = vadd.f32 %v1431_v52, %v531_v8 }
 0x1f9   :  { %v562_v12 = vmax.f32 %v532_v9, 0.0 }
 0x1fe   :  { %v533_v10 = vpop.f32.mrf.mxu2 }
 0x1ff   :  { %v534_v11 = vadd.f32 %v1431_v52, %v533_v10 }
 0x201   :  { %v563_v13 = vmax.f32 %v534_v11, 0.0 }
 0x203   :  { %v575_v14 = vpack.c.bf16 %v563_v13, %v562_v12 }
 0x205   :  { %671 = vmatmul.bf16.gmra.mxu3 %v575_v14 }
 0x206   :  { %v536_v15 = vpop.f32.mrf.mxu2 }
 0x207   :  { %v537_v16 = vadd.f32 %v1431_v52, %v536_v15 }
 0x209   :  { %v564_v19 = vmax.f32 %v537_v16, 0.0 }
 0x20e   :  { %v538_v17 = vpop.f32.mrf.mxu2 }
 0x20f   :  { %v539_v18 = vadd.f32 %v1431_v52, %v538_v17 }
 0x211   :  { %v565_v20 = vmax.f32 %v539_v18, 0.0 }
 0x213   :  { %v576_v21 = vpack.c.bf16 %v565_v20, %v564_v19 }
 0x215   :  { %676 = vmatmul.bf16.gmra.mxu3 %v576_v21 }
 0x216   :  { %v541_v22 = vpop.f32.mrf.mxu2 }
 0x217   :  { %v542_v23 = vadd.f32 %v1431_v52, %v541_v22 }
 0x219   :  { %v566_v28 = vmax.f32 %v542_v23, 0.0 }
 0x21e   :  { %v543_v24 = vpop.f32.mrf.mxu2 }
 0x21f   :  { %v544_v26 = vadd.f32 %v1431_v52, %v543_v24 }
 0x221   :  { %v567_v25 = vmax.f32 %v544_v26, 0.0 }
 0x223   :  { %v577_v29 = vpack.c.bf16 %v567_v25, %v566_v28 }
 0x225   :  { %681 = vmatmul.bf16.gmra.mxu3 %v577_v29 }
 0x226   :  { %v546_v31 = vpop.f32.mrf.mxu2 }
 0x227   :  { %v547_v34 = vadd.f32 %v1431_v52, %v546_v31 }
 0x229   :  { %v568_v38 = vmax.f32 %v547_v34, 0.0 }
 0x22e   :  { %v548_v35 = vpop.f32.mrf.mxu2 }
 0x22f   :  { %v549_v37 = vadd.f32 %v1431_v52, %v548_v35 }
 0x231   :  { %v569_v39 = vmax.f32 %v549_v37, 0.0 }
 0x233   :  { %v578_v41 = vpack.c.bf16 %v569_v39, %v568_v38 }
 0x235   :  { %686 = vmatmul.bf16.gmra.mxu3 %v578_v41 }
 0x236   :  { %v551_v42 = vpop.f32.mrf.mxu2 }
 0x237   :  { %v552_v45 = vadd.f32 %v1431_v52, %v551_v42 }
 0x239   :  { %v570_v49 = vmax.f32 %v552_v45, 0.0 }
 0x23e   :  { %v553_v46 = vpop.f32.mrf.mxu2 }
 0x23f   :  { %v554_v47 = vadd.f32 %v1431_v52, %v553_v46 }
 0x241   :  { %v571_v50 = vmax.f32 %v554_v47, 0.0 }
 0x243   :  { %v579_v51 = vpack.c.bf16 %v571_v50, %v570_v49 }
 0x245   :  { %691 = vmatmul.bf16.gmra.mxu3 %v579_v51 }
 0x258   :  { %v657_v53 = vpop.f32.mrf.mxu3 }
 0x259   :  { %v658_v56 = vadd.f32 %v1132_v54, %v657_v53 }
 0x260   :  { %v659_v55 = vpop.f32.mrf.mxu3 }
 0x261   :  { %v660_v27 = vadd.f32 %v1132_v54, %v659_v55 }
 0x263   :  { %v697_v57 = vpack.c.bf16 %v660_v27, %v658_v56 }
 0x265   :  { %781 = vmatmul.bf16.vlgmr.msrb.gmra.mxu0 %v697_v57 }
 0x268   :  { %v662_v58 = vpop.f32.mrf.mxu3 }
 0x269   :  { %v663_v60 = vadd.f32 %v1132_v54, %v662_v58 }
 0x270   :  { %v664_v59 = vpop.f32.mrf.mxu3 }
 0x271   :  { %v665_v52 = vadd.f32 %v1132_v54, %v664_v59 }
 0x273   :  { %v698_v61 = vpack.c.bf16 %v665_v52, %v663_v60 }
 0x275   :  { %786 = vmatmul.bf16.gmra.mxu0 %v698_v61 }
 0x278   :  { %v667_v62 = vpop.f32.mrf.mxu3 }
 0x279   :  { %v668_v0 = vadd.f32 %v1132_v54, %v667_v62 }
 0x280   :  { %v669_v63 = vpop.f32.mrf.mxu3 }
 0x281   :  { %v670_v1 = vadd.f32 %v1132_v54, %v669_v63 }
 0x283   :  { %v699_v2 = vpack.c.bf16 %v670_v1, %v668_v0 }
 0x285   :  { %791 = vmatmul.bf16.gmra.mxu0 %v699_v2 }
 0x288   :  { %v672_v3 = vpop.f32.mrf.mxu3 }
 0x289   :  { %v673_v5 = vadd.f32 %v1132_v54, %v672_v3 }
 0x290   :  { %v674_v4 = vpop.f32.mrf.mxu3 }
 0x291   :  { %v675_v6 = vadd.f32 %v1132_v54, %v674_v4 }
 0x293   :  { %v700_v7 = vpack.c.bf16 %v675_v6, %v673_v5 }
 0x295   :  { %796 = vmatmul.bf16.gmra.mxu0 %v700_v7 }
 0x298   :  { %v677_v8 = vpop.f32.mrf.mxu3 }
 0x299   :  { %v678_v10 = vadd.f32 %v1132_v54, %v677_v8 }
 0x2a0   :  { %v679_v9 = vpop.f32.mrf.mxu3 }
 0x2a1   :  { %v680_v11 = vadd.f32 %v1132_v54, %v679_v9 }
 0x2a3   :  { %v701_v12 = vpack.c.bf16 %v680_v11, %v678_v10 }
 0x2a5   :  { %801 = vmatmul.bf16.gmra.mxu0 %v701_v12 }
 0x2a8   :  { %v682_v13 = vpop.f32.mrf.mxu3 }
 0x2a9   :  { %v683_v15 = vadd.f32 %v1132_v54, %v682_v13 }
 0x2b0   :  { %v684_v14 = vpop.f32.mrf.mxu3 }
 0x2b1   :  { %v685_v16 = vadd.f32 %v1132_v54, %v684_v14 }
 0x2b3   :  { %v702_v17 = vpack.c.bf16 %v685_v16, %v683_v15 }
 0x2b5   :  { %806 = vmatmul.bf16.gmra.mxu0 %v702_v17 }
 0x2b8   :  { %v687_v18 = vpop.f32.mrf.mxu3 }
 0x2b9   :  { %v688_v20 = vadd.f32 %v1132_v54, %v687_v18 }
 0x2c0   :  { %v689_v19 = vpop.f32.mrf.mxu3 }
 0x2c1   :  { %v690_v21 = vadd.f32 %v1132_v54, %v689_v19 }
 0x2c3   :  { %v703_v22 = vpack.c.bf16 %v690_v21, %v688_v20  ;;  %v846_v21 = vld [vmem:[%s1475_s11] sm:$0x1] }
 0x2c5   :  { %811 = vmatmul.bf16.gmra.mxu0 %v703_v22  ;;  %v848_v22 = vstv %s1476_s12 }
 0x2c8   :  { %v692_v23 = vpop.f32.mrf.mxu3 }
 0x2c9   :  { %v693_v26 = vadd.f32 %v1132_v54, %v692_v23 }
 0x2d0   :  { %v694_v24 = vpop.f32.mrf.mxu3 }
 0x2d1   :  { %v695_v28 = vadd.f32 %v1132_v54, %v694_v24 }
 0x2d3   :  { %v704_v25 = vpack.c.bf16 %v695_v28, %v693_v26 }
 0x2d5   :  { %816 = vmatmul.bf16.gmra.mxu0 %v704_v25 }
 0x2e2   :  { %v782_v29 = vpop.f32.mrf.mxu0 }
 0x2e3   :  { %v783_v31 = vadd.f32 %v1133_v30, %v782_v29 }
 0x2e5   :  { %v822_v34 = vmax.f32 %v783_v31, 0.0 }
 0x2ea   :  { %v784_v32 = vpop.f32.mrf.mxu0 }
 0x2eb   :  { %v785_v33 = vadd.f32 %v1133_v30, %v784_v32 }
 0x2ed   :  { %v823_v35 = vmax.f32 %v785_v33, 0.0 }
 0x2ef   :  { %v838_v36 = vpack.c.bf16 %v823_v35, %v822_v34 }
 0x2f2   :  { %v787_v37 = vpop.f32.mrf.mxu0 }
 0x2f3   :  { %v788_v38 = vadd.f32 %v1133_v30, %v787_v37 }
 0x2f5   :  { %v824_v41 = vmax.f32 %v788_v38, 0.0 }
 0x2fa   :  { %v789_v39 = vpop.f32.mrf.mxu0 }
 0x2fb   :  { %v790_v40 = vadd.f32 %v1133_v30, %v789_v39 }
 0x2fd   :  { %v825_v42 = vmax.f32 %v790_v40, 0.0 }
 0x2ff   :  { %v839_v43 = vpack.c.bf16 %v825_v42, %v824_v41 }
 0x302   :  { %v792_v44 = vpop.f32.mrf.mxu0 }
 0x303   :  { %v793_v45 = vadd.f32 %v1133_v30, %v792_v44 }
 0x305   :  { %v826_v48 = vmax.f32 %v793_v45, 0.0 }
 0x30a   :  { %v794_v46 = vpop.f32.mrf.mxu0 }
 0x30b   :  { %v795_v47 = vadd.f32 %v1133_v30, %v794_v46 }
 0x30d   :  { %v827_v49 = vmax.f32 %v795_v47, 0.0 }
 0x30f   :  { %v840_v50 = vpack.c.bf16 %v827_v49, %v826_v48 }
 0x312   :  { %v797_v51 = vpop.f32.mrf.mxu0 }
 0x313   :  { %v798_v53 = vadd.f32 %v1133_v30, %v797_v51 }
 0x315   :  { %v828_v56 = vmax.f32 %v798_v53, 0.0 }
 0x31a   :  { %v799_v54 = vpop.f32.mrf.mxu0 }
 0x31b   :  { %v800_v55 = vadd.f32 %v1133_v30, %v799_v54 }
 0x31d   :  { %v829_v27 = vmax.f32 %v800_v55, 0.0 }
 0x31f   :  { %v841_v57 = vpack.c.bf16 %v829_v27, %v828_v56 }
 0x322   :  { %v802_v58 = vpop.f32.mrf.mxu0 }
 0x323   :  { %v803_v59 = vadd.f32 %v1133_v30, %v802_v58 }
 0x325   :  { %v830_v61 = vmax.f32 %v803_v59, 0.0 }
 0x32a   :  { %v804_v60 = vpop.f32.mrf.mxu0 }
 0x32b   :  { %v805_v52 = vadd.f32 %v1133_v30, %v804_v60 }
 0x32d   :  { %v831_v62 = vmax.f32 %v805_v52, 0.0 }
 0x32f   :  { %v842_v63 = vpack.c.bf16 %v831_v62, %v830_v61 }
 0x332   :  { %v807_v0 = vpop.f32.mrf.mxu0 }
 0x333   :  { %v808_v17 = vadd.f32 %v1133_v30, %v807_v0 }
 0x335   :  { %v832_v19 = vmax.f32 %v808_v17, 0.0 }
 0x33a   :  { %v809_v1 = vpop.f32.mrf.mxu0 }
 0x33b   :  { %v810_v15 = vadd.f32 %v1133_v30, %v809_v1 }
 0x33d   :  { %v833_v18 = vmax.f32 %v810_v15, 0.0 }
 0x33f   :  { %v843_v20 = vpack.c.bf16 %v833_v18, %v832_v19 }
 0x342   :  { %v812_v2 = vpop.f32.mrf.mxu0 }
 0x343   :  { %v813_v12 = vadd.f32 %v1133_v30, %v812_v2 }
 0x345   :  { %v834_v14 = vmax.f32 %v813_v12, 0.0 }
 0x34a   :  { %v814_v3 = vpop.f32.mrf.mxu0 }
 0x34b   :  { %v815_v10 = vadd.f32 %v1133_v30, %v814_v3 }
 0x34d   :  { %v835_v13 = vmax.f32 %v815_v10, 0.0 }
 0x34f   :  { %v844_v16 = vpack.c.bf16 %v835_v13, %v834_v14 }
 0x352   :  { %v817_v4 = vpop.f32.mrf.mxu0 }
 0x353   :  { %v818_v5 = vadd.f32 %v1133_v30, %v817_v4 }
 0x355   :  { %v836_v8 = vmax.f32 %v818_v5, 0.0 }
 0x35a   :  { %v819_v6 = vpop.f32.mrf.mxu0 }
 0x35b   :  { %v820_v7 = vadd.f32 %v1133_v30, %v819_v6 }
 0x35d   :  { %v837_v9 = vmax.f32 %v820_v7, 0.0 }
 0x35f   :  { %v845_v11 = vpack.c.bf16 %v837_v9, %v836_v8 }
 0x361   :  { %849 = vmatpush.bf16.xpose.msrb.mxu1 %v845_v11 }
 0x369   :  { %850 = vmatpush.bf16.xpose.msrb.mxu1 %v844_v16 }
 0x371   :  { %851 = vmatpush.bf16.xpose.msrb.mxu1 %v843_v20 }
 0x379   :  { %852 = vmatpush.bf16.xpose.msrb.mxu1 %v842_v63 }
 0x381   :  { %853 = vmatpush.bf16.xpose.msrb.mxu1 %v841_v57 }
 0x389   :  { %854 = vmatpush.bf16.xpose.msrb.mxu1 %v840_v50 }
 0x391   :  { %855 = vmatpush.bf16.xpose.msrb.mxu1 %v839_v43 }
 0x399   :  { %856 = vmatpush.bf16.xpose.msrb.mxu1 %v838_v36 }
 0x3a0   :  { %857 = vmatmul.bf16.vlgmr.msrb.gmra.mxu1 %v846_v21 }
 0x41d   :  { %v858_v23 = vpop.f32.mrf.mxu1 }
 0x41e   :  { %v859_v24 = vadd.f32 %v858_v23, %v848_v22 }
 0x420   :  { %862 = vst [vmem:[%s1477_s13] sm:$0x1] %v859_v24 }
 0x425   :  { %v860_v26 = vpop.f32.mrf.mxu1 }
 0x426   :  { %867 = vsyncpa [#allocation4], 1 }
 0x427   :  { %868 = vsyncpa [#allocation6], 1 }

</bundles_post_ra>
